<compile_context>
chip_gen: v7x
topology: tpu7x:2x2x1
jax: 0.10.0
libtpu: 0.0.40
codegen_flags: <defaults>
</compile_context>

<pallas_src>
import functools

import jax
import jax.numpy as jnp
from jax.experimental import pallas as pl
from jax.experimental.pallas import tpu as pltpu

INPUT_DIM = 500   # TfidfVectorizer(max_features=500)
H1 = 128
H2 = 64
OUT = 2
OUT_PAD = 128     # fc3 weight padded to a full lane width for the MXU matmul
DEFAULT_BATCH_TILE = 512


def _round_up(x, m):
    return ((x + m - 1) // m) * m


def _tensorcores_per_chip():
    """2 on v7x (megacore grid split pays off), 1 on v5e/v6e/unknown."""
    try:
        kind = jax.devices()[0].device_kind.lower()
    except Exception:
        return 1
    return 2 if "v7" in kind else 1


def _mlp_kernel(x_ref, w1_ref, b1_ref, w2_ref, b2_ref, w3_ref, b3_ref, o_ref):
    # In-kernel bf16 cast of the x tile (VPU work, hidden under the x DMA).
    x = x_ref[...].astype(jnp.bfloat16)
    # fc1 + relu  (bf16 x bf16 -> f32 accumulate on the MXU)
    h1 = jnp.dot(x, w1_ref[...], preferred_element_type=jnp.float32)
    h1 = jnp.maximum(h1 + b1_ref[...], 0.0)
    # dropout(p=0.3): identity in eval/inference mode.
    # TODO(synk): training-mode dropout (Bernoulli mask via pltpu.prng_*) not implemented.
    # fc2 + relu
    h2 = jnp.dot(h1.astype(jnp.bfloat16), w2_ref[...],
                 preferred_element_type=jnp.float32)
    h2 = jnp.maximum(h2 + b2_ref[...], 0.0)
    # fc3 on the 128-lane-padded weight; only the first OUT columns are stored.
    logits = jnp.dot(h2.astype(jnp.bfloat16), w3_ref[...],
                     preferred_element_type=jnp.float32)
    o_ref[...] = (logits[:, :OUT] + b3_ref[...]).astype(o_ref.dtype)


def prepare_params(w1, b1, w2, b2, w3, b3):
    """One-time (model-load) weight prep: bf16 cast, fc3 padded to 128 lanes.

    Keeps the per-call forward path free of tiny pad/cast XLA launches.
    """
    w3_p = jnp.pad(w3, ((0, 0), (0, OUT_PAD - w3.shape[1])))
    return (w1.astype(jnp.bfloat16), b1,
            w2.astype(jnp.bfloat16), b2,
            w3_p.astype(jnp.bfloat16), b3)


@functools.partial(jax.jit, static_argnames=("batch_tile",))
def sentiment_forward(x, w1, b1, w2, b2, w3, b3, *, batch_tile=DEFAULT_BATCH_TILE):
    """x: (B, D) f32; w1/w2/w3: bf16 (w3 padded to OUT_PAD); b*: f32 (1, out).

    Returns (B, OUT) f32 logits. Use `prepare_params` once on the raw f32
    PyTorch-style weights before calling.
    """
    B, D = x.shape
    num_tc = _tensorcores_per_chip()

    # ---- batch tiling: no wrapper-side padding / copies of x -----------------
    if B <= batch_tile:
        tile = B                                   # single block; == full dim is legal
    else:
        tile = _round_up(min(batch_tile, B), 8)    # ragged last block handled by Pallas
    # v7x megacore only: 2-way split, and only when each core keeps >=256 rows.
    if num_tc >= 2 and B >= 2 * 256 and pl.cdiv(B, tile) < 2:
        tile = _round_up(pl.cdiv(B, num_tc), 8)
    grid = (pl.cdiv(B, tile),)

    # Weights/biases are tiny -> full-array resident blocks; only batch is tiled.
    in_specs = [
        pl.BlockSpec((tile, D), lambda i: (i, 0)),        # x tile (f32, full K)
        pl.BlockSpec((D, H1), lambda i: (0, 0)),          # w1 (bf16)
        pl.BlockSpec((1, H1), lambda i: (0, 0)),          # b1 (f32)
        pl.BlockSpec((H1, H2), lambda i: (0, 0)),         # w2 (bf16)
        pl.BlockSpec((1, H2), lambda i: (0, 0)),          # b2 (f32)
        pl.BlockSpec((H2, OUT_PAD), lambda i: (0, 0)),    # w3 padded (bf16)
        pl.BlockSpec((1, OUT), lambda i: (0, 0)),         # b3 (f32)
    ]
    out_spec = pl.BlockSpec((tile, OUT), lambda i: (i, 0))

    return pl.pallas_call(
        _mlp_kernel,
        out_shape=jax.ShapeDtypeStruct((B, OUT), jnp.float32),
        grid_spec=pltpu.PrefetchScalarGridSpec(
            num_scalar_prefetch=0,
            grid=grid,
            in_specs=in_specs,
            out_specs=out_spec,
        ),
        compiler_params=pltpu.CompilerParams(
            dimension_semantics=("parallel",),
            vmem_limit_bytes=32 * 1024 * 1024,
        ),
    )(x, w1, b1, w2, b2, w3, b3)


def _reference_forward(x, w1, b1, w2, b2, w3, b3):
    # Mirror the kernel's numerics: bf16 inputs, f32 accumulation.
    xb = x.astype(jnp.bfloat16)
    h1 = jnp.maximum(
        jnp.dot(xb, w1.astype(jnp.bfloat16), preferred_element_type=jnp.float32) + b1, 0.0)
    h2 = jnp.maximum(
        jnp.dot(h1.astype(jnp.bfloat16), w2.astype(jnp.bfloat16),
                preferred_element_type=jnp.float32) + b2, 0.0)
    return jnp.dot(h2.astype(jnp.bfloat16), w3.astype(jnp.bfloat16),
                   preferred_element_type=jnp.float32) + b3


def _reference_forward_f32(x, w1, b1, w2, b2, w3, b3):
    # Full f32 reference (matches the original PyTorch module's numerics).
    h1 = jnp.maximum(x @ w1 + b1, 0.0)
    h2 = jnp.maximum(h1 @ w2 + b2, 0.0)
    return h2 @ w3 + b3


def _init_params(key):
    # Deterministic init mimicking nn.Linear's uniform(-1/sqrt(fan_in), 1/sqrt(fan_in)).
    ks = jax.random.split(key, 6)

    def lin(kw, kb, fan_in, fan_out):
        bound = 1.0 / jnp.sqrt(jnp.float32(fan_in))
        w = jax.random.uniform(kw, (fan_in, fan_out), jnp.float32, -bound, bound)
        b = jax.random.uniform(kb, (1, fan_out), jnp.float32, -bound, bound)
        return w, b

    w1, b1 = lin(ks[0], ks[1], INPUT_DIM, H1)
    w2, b2 = lin(ks[2], ks[3], H1, H2)
    w3, b3 = lin(ks[4], ks[5], H2, OUT)
    return w1, b1, w2, b2, w3, b3


if __name__ == "__main__":
    key = jax.random.PRNGKey(0)
    k_x, k_p = jax.random.split(key)

    params_f32 = _init_params(k_p)
    params = prepare_params(*params_f32)   # one-time "model load" prep

    # TF-IDF features are non-negative; use |normal| as a stand-in.
    batch = 16
    x = jnp.abs(jax.random.normal(k_x, (batch, INPUT_DIM), jnp.float32))

    out = jax.block_until_ready(sentiment_forward(x, *params))
    assert out.shape == (batch, OUT), out.shape
    ref = _reference_forward(x, *params_f32)
    assert jnp.allclose(out, ref, atol=2e-2, rtol=2e-2), "mismatch vs bf16 reference"
    ref32 = _reference_forward_f32(x, *params_f32)
    assert jnp.allclose(out, ref32, atol=1e-1, rtol=1e-1), "mismatch vs f32 reference"

    # Ragged batch in the single-block path (tile == B == 13).
    x2 = jnp.abs(jax.random.normal(k_x, (13, INPUT_DIM), jnp.float32))
    out2 = jax.block_until_ready(sentiment_forward(x2, *params))
    ref2 = _reference_forward(x2, *params_f32)
    assert out2.shape == (13, OUT), out2.shape
    assert jnp.allclose(out2, ref2, atol=2e-2, rtol=2e-2), "mismatch (ragged single block)"

    # Multi-step grid with a ragged last block (B=40, tile=16 -> grid=3).
    x3 = jnp.abs(jax.random.normal(k_x, (40, INPUT_DIM), jnp.float32))
    out3 = jax.block_until_ready(sentiment_forward(x3, *params, batch_tile=16))
    ref3 = _reference_forward(x3, *params_f32)
    assert out3.shape == (40, OUT), out3.shape
    assert jnp.allclose(out3, ref3, atol=2e-2, rtol=2e-2), "mismatch (ragged multi-block)"

    print("KERNEL_OK")
</pallas_src>

<mosaic_0001>
module attributes {stable_mosaic.version = 11 : i64} {
  func.func @_mlp_kernel(%arg0: i32, %arg1: memref<16x500xf32, #tpu.memory_space<vmem>>, %arg2: memref<500x128xbf16, #tpu.memory_space<vmem>>, %arg3: memref<1x128xf32, #tpu.memory_space<vmem>>, %arg4: memref<128x64xbf16, #tpu.memory_space<vmem>>, %arg5: memref<1x64xf32, #tpu.memory_space<vmem>>, %arg6: memref<64x128xbf16, #tpu.memory_space<vmem>>, %arg7: memref<1x2xf32, #tpu.memory_space<vmem>>, %arg8: memref<16x2xf32, #tpu.memory_space<vmem>>) attributes {dimension_semantics = [#tpu.dimension_semantics<parallel>], iteration_bounds = array<i64: 1>, scalar_prefetch = 0 : i64, scratch_operands = 0 : i64, tpu.core_type = #tpu.core_type<tc>, window_params = [{transform_indices = @transform_0, window_bounds = array<i64: 16, 500>}, {pipeline_mode = #tpu.pipeline_mode<synchronous>, transform_indices = @transform_1, window_bounds = array<i64: 500, 128>}, {pipeline_mode = #tpu.pipeline_mode<synchronous>, transform_indices = @transform_2, window_bounds = array<i64: 1, 128>}, {pipeline_mode = #tpu.pipeline_mode<synchronous>, transform_indices = @transform_3, window_bounds = array<i64: 128, 64>}, {pipeline_mode = #tpu.pipeline_mode<synchronous>, transform_indices = @transform_4, window_bounds = array<i64: 1, 64>}, {pipeline_mode = #tpu.pipeline_mode<synchronous>, transform_indices = @transform_5, window_bounds = array<i64: 64, 128>}, {pipeline_mode = #tpu.pipeline_mode<synchronous>, transform_indices = @transform_6, window_bounds = array<i64: 1, 2>}, {transform_indices = @transform_7, window_bounds = array<i64: 16, 2>}]} {
    %c0 = arith.constant 0 : index
    %c0_0 = arith.constant 0 : index
    %0 = vector.load %arg1[%c0, %c0_0] : memref<16x500xf32, #tpu.memory_space<vmem>>, vector<16x500xf32>
    %1 = arith.truncf %0 : vector<16x500xf32> to vector<16x500xbf16>
    %c0_1 = arith.constant 0 : index
    %c0_2 = arith.constant 0 : index
    %2 = vector.load %arg2[%c0_1, %c0_2] : memref<500x128xbf16, #tpu.memory_space<vmem>>, vector<500x128xbf16>
    %cst = arith.constant dense<0.000000e+00> : vector<16x128xf32>
    %3 = tpu.matmul %1, %2, %cst {dimension_numbers = #tpu.dot_dimension_numbers<[1], [0], [0], [1], [0, 0, 1, 1], [], []>} : vector<16x500xbf16>, vector<500x128xbf16>, vector<16x128xf32> -> vector<16x128xf32>
    %c0_3 = arith.constant 0 : index
    %c0_4 = arith.constant 0 : index
    %4 = vector.load %arg3[%c0_3, %c0_4] : memref<1x128xf32, #tpu.memory_space<vmem>>, vector<1x128xf32>
    %5 = vector.broadcast %4 : vector<1x128xf32> to vector<16x128xf32>
    %6 = arith.addf %3, %5 : vector<16x128xf32>
    %cst_5 = arith.constant 0.000000e+00 : f32
    %7 = vector.broadcast %cst_5 : f32 to vector<16x128xf32>
    %8 = arith.maximumf %6, %7 : vector<16x128xf32>
    %9 = arith.truncf %8 : vector<16x128xf32> to vector<16x128xbf16>
    %c0_6 = arith.constant 0 : index
    %c0_7 = arith.constant 0 : index
    %10 = vector.load %arg4[%c0_6, %c0_7] : memref<128x64xbf16, #tpu.memory_space<vmem>>, vector<128x64xbf16>
    %cst_8 = arith.constant dense<0.000000e+00> : vector<16x64xf32>
    %11 = tpu.matmul %9, %10, %cst_8 {dimension_numbers = #tpu.dot_dimension_numbers<[1], [0], [0], [1], [0, 0, 1, 1], [], []>} : vector<16x128xbf16>, vector<128x64xbf16>, vector<16x64xf32> -> vector<16x64xf32>
    %c0_9 = arith.constant 0 : index
    %c0_10 = arith.constant 0 : index
    %12 = vector.load %arg5[%c0_9, %c0_10] : memref<1x64xf32, #tpu.memory_space<vmem>>, vector<1x64xf32>
    %13 = vector.broadcast %12 : vector<1x64xf32> to vector<16x64xf32>
    %14 = arith.addf %11, %13 : vector<16x64xf32>
    %cst_11 = arith.constant 0.000000e+00 : f32
    %15 = vector.broadcast %cst_11 : f32 to vector<16x64xf32>
    %16 = arith.maximumf %14, %15 : vector<16x64xf32>
    %17 = arith.truncf %16 : vector<16x64xf32> to vector<16x64xbf16>
    %c0_12 = arith.constant 0 : index
    %c0_13 = arith.constant 0 : index
    %18 = vector.load %arg6[%c0_12, %c0_13] : memref<64x128xbf16, #tpu.memory_space<vmem>>, vector<64x128xbf16>
    %cst_14 = arith.constant dense<0.000000e+00> : vector<16x128xf32>
    %19 = tpu.matmul %17, %18, %cst_14 {dimension_numbers = #tpu.dot_dimension_numbers<[1], [0], [0], [1], [0, 0, 1, 1], [], []>} : vector<16x64xbf16>, vector<64x128xbf16>, vector<16x128xf32> -> vector<16x128xf32>
    %20 = vector.extract_strided_slice %19 {offsets = [0, 0], sizes = [16, 2], strides = [1, 1]} : vector<16x128xf32> to vector<16x2xf32>
    %c0_15 = arith.constant 0 : index
    %c0_16 = arith.constant 0 : index
    %21 = vector.load %arg7[%c0_15, %c0_16] : memref<1x2xf32, #tpu.memory_space<vmem>>, vector<1x2xf32>
    %22 = vector.broadcast %21 : vector<1x2xf32> to vector<16x2xf32>
    %23 = arith.addf %20, %22 : vector<16x2xf32>
    %c0_17 = arith.constant 0 : index
    %c0_18 = arith.constant 0 : index
    %24 = vector.load %arg8[%c0_17, %c0_18] : memref<16x2xf32, #tpu.memory_space<vmem>>, vector<16x2xf32>
    tpu.vector_store %arg8[%c0_17, %c0_18], %23 {strides = array<i32>} : memref<16x2xf32, #tpu.memory_space<vmem>>, vector<16x2xf32>,
    return
  }
  func.func @transform_0(%arg0: i32) -> (i32, i32) {
    %c0_i32 = arith.constant 0 : i32
    %c0_i32_0 = arith.constant 0 : i32
    return %arg0, %c0_i32 : i32, i32
  }
  func.func @transform_1(%arg0: i32) -> (i32, i32) {
    %c0_i32 = arith.constant 0 : i32
    %c0_i32_0 = arith.constant 0 : i32
    %c0_i32_1 = arith.constant 0 : i32
    return %c0_i32, %c0_i32_0 : i32, i32
  }
  func.func @transform_2(%arg0: i32) -> (i32, i32) {
    %c0_i32 = arith.constant 0 : i32
    %c0_i32_0 = arith.constant 0 : i32
    %c0_i32_1 = arith.constant 0 : i32
    return %c0_i32, %c0_i32_0 : i32, i32
  }
  func.func @transform_3(%arg0: i32) -> (i32, i32) {
    %c0_i32 = arith.constant 0 : i32
    %c0_i32_0 = arith.constant 0 : i32
    %c0_i32_1 = arith.constant 0 : i32
    return %c0_i32, %c0_i32_0 : i32, i32
  }
  func.func @transform_4(%arg0: i32) -> (i32, i32) {
    %c0_i32 = arith.constant 0 : i32
    %c0_i32_0 = arith.constant 0 : i32
    %c0_i32_1 = arith.constant 0 : i32
    return %c0_i32, %c0_i32_0 : i32, i32
  }
  func.func @transform_5(%arg0: i32) -> (i32, i32) {
    %c0_i32 = arith.constant 0 : i32
    %c0_i32_0 = arith.constant 0 : i32
    %c0_i32_1 = arith.constant 0 : i32
    return %c0_i32, %c0_i32_0 : i32, i32
  }
  func.func @transform_6(%arg0: i32) -> (i32, i32) {
    %c0_i32 = arith.constant 0 : i32
    %c0_i32_0 = arith.constant 0 : i32
    %c0_i32_1 = arith.constant 0 : i32
    return %c0_i32, %c0_i32_0 : i32, i32
  }
  func.func @transform_7(%arg0: i32) -> (i32, i32) {
    %c0_i32 = arith.constant 0 : i32
    %c0_i32_0 = arith.constant 0 : i32
    return %arg0, %c0_i32 : i32, i32
  }
}

</mosaic_0001>

<bundles_post_ra>
// kernel: sentiment_forward.1
= control target key start
LH: loop header
LB: loop body
LE: loop exit
PB: predicated region body
PF: predicated region fallthrough
CT: control target
= control target key end

     0   :  { %12 = vsyncpa [#allocation3], 0  ;;  %s827_s24 = smov [#allocation2]   ;;  %s973_s0 = inlined_call_operand.vmem [shape: f32[16,500], index: 0, kind: input, shape index: {}]   ;;  %s974_s1 = inlined_call_operand.hbm [shape: bf16[500,128], index: 1, kind: input, shape index: {}]   ;;  %s975_s2 = inlined_call_operand.vmem [shape: f32[1,128], index: 2, kind: input, shape index: {}]   ;;  %s976_s3 = inlined_call_operand.vmem [shape: bf16[128,64], index: 3, kind: input, shape index: {}]   ;;  %s977_s4 = inlined_call_operand.vmem [shape: f32[1,64], index: 4, kind: input, shape index: {}]   ;;  %s978_s5 = inlined_call_operand.vmem [shape: bf16[64,128], index: 5, kind: input, shape index: {}]   ;;  %s979_s6 = inlined_call_operand.vmem [shape: f32[1,2], index: 6, kind: input, shape index: {}]   ;;  %s980_s7 = inlined_call_operand.vmem [shape: f32[16,2], index: 7, kind: output, shape index: {}]  }
   0x1   :  { %s20_s25 = sshll.u32 %s827_s24, 4  ;;  %s803_s28 = scalar_lea.hbm %s974_s1, 4032  ;;  %s21_s25 = int_to_ptr.vmem [resolvable:$true] %s20_s25 }
   0x2   :  { %p804_p0 = scmp.ne.s32.totalorder %s974_s1, %s803_s28  ;;  %p807_p1 = scmp.lt.u32.totalorder %s803_s28, %s974_s1 }
   0x4   :  { %p809_p2 = pnand %p807_p1, %p804_p0 }
   0x6   :  { %812 = shalt.err (!%p809_p2)
}
   0x7   :  { %s813_s10 = scalar_lea.vmem %s21_s25, 4032  ;;  %p818_p4 = scmp.lt.s32.totalorder %s21_s25, %s21_s25 }
   0x8   :  { %p814_p3 = scmp.ne.s32.totalorder %s21_s25, %s813_s10  ;;  %p819_p5 = scmp.lt.s32.totalorder %s813_s10, %s813_s10 }
   0xa   :  { %p820_p6 = por %p819_p5, %p818_p4 }
   0xc   :  { %p821_p7 = pnand %p820_p6, %p814_p3 }
   0xe   :  { %824 = shalt.err (!%p821_p7)
}
   0xf   :  { %s828_s11 = smov 64   ;;  %s829_s12 = smov 4  }
  0x10   :  { %26 = dma.hbm_to_vmem [thread:$0]  %s974_s1, 4032, %s21_s25, [#allocation3], %s828_s11, %s828_s11, %s829_s12  }
  0x11   :  { %825 = dma.done.wait [#allocation3], 4032  }
  0x12   :  { %826 = vsyncadd [#allocation3], 4294963264  ;;  %v759_v0 = vld [vmem:[#allocation2 + $0x40] sm:$0xff]   ;;  %v763_v4 = vld [vmem:[#allocation2 + $0x48] sm:$0xff]   ;;  %vm316_vm0 = vcmask 1041408   ;;  %vm312_vm1 = vcmask 949248  }
  0x13   :  { %v760_v1 = vld [vmem:[#allocation2 + $0xc0] sm:$0xff]   ;;  %663 = vmatprep.subr.bf16.mxu0 %v759_v0  ;;  %v764_v5 = vld [vmem:[#allocation2 + $0xc8] sm:$0xff]   ;;  %v767_v8 = vld [vmem:[#allocation2 + $0x50] sm:$0xff]   ;;  %v830_v41 = vmov 0.0   ;;  %vm831_vm2 = vmmov 0   ;;  %vm552_vm3 = vcmask 523264  }
  0x14   :  { %v761_v2 = vld [vmem:[#allocation2] sm:$0xff]   ;;  %685 = vmatprep.subr.bf16.mxu1 %v760_v1  ;;  %v765_v6 = vld [vmem:[#allocation2 + $0x8] sm:$0xff]   ;;  %v768_v9 = vld [vmem:[#allocation2 + $0xd0] sm:$0xff]   ;;  %vm606_vm4 = vcmask 15360  }
  0x15   :  { %v762_v3 = vld [vmem:[#allocation2 + $0x80] sm:$0xff]   ;;  %664 = vmatpush3.bf16.msra.mxu0 %v761_v2  ;;  %v766_v7 = vld [vmem:[#allocation2 + $0x88] sm:$0xff]   ;;  %v769_v10 = vld [vmem:[#allocation2 + $0x10] sm:$0xff]  }
  0x16   :  { %686 = vmatpush3.bf16.msra.mxu1 %v762_v3  ;;  %665 = vmatprep.subr.bf16.mxu0 %v763_v4  ;;  %v770_v11 = vld [vmem:[#allocation2 + $0x90] sm:$0xff]   ;;  %v771_v12 = vld [vmem:[#allocation2 + $0x58] sm:$0xff]   ;;  %v775_v16 = vld [vmem:[#allocation2 + $0x60] sm:$0xff]  }
  0x17   :  { %687 = vmatprep.subr.bf16.mxu1 %v764_v5  ;;  %v772_v13 = vld [vmem:[#allocation2 + $0xd8] sm:$0xff]   ;;  %v776_v17 = vld [vmem:[#allocation2 + $0xe0] sm:$0xff]   ;;  %v779_v20 = vld [vmem:[#allocation2 + $0x68] sm:$0xff]  }
  0x18   :  { %v773_v14 = vld [vmem:[#allocation2 + $0x18] sm:$0xff]   ;;  %v777_v18 = vld [vmem:[#allocation2 + $0x20] sm:$0xff]   ;;  %v780_v21 = vld [vmem:[#allocation2 + $0xe8] sm:$0xff]  }
  0x19   :  { %666 = vmatpush3.bf16.msra.mxu0 %v765_v6  ;;  %v774_v15 = vld [vmem:[#allocation2 + $0x98] sm:$0xff]   ;;  %v778_v19 = vld [vmem:[#allocation2 + $0xa0] sm:$0xff]   ;;  %v781_v22 = vld [vmem:[#allocation2 + $0x28] sm:$0xff]  }
  0x1a   :  { %688 = vmatpush3.bf16.msra.mxu1 %v766_v7  ;;  %667 = vmatprep.subr.bf16.mxu0 %v767_v8  ;;  %v782_v23 = vld [vmem:[#allocation2 + $0xa8] sm:$0xff]   ;;  %v783_v24 = vld [vmem:[#allocation2 + $0x70] sm:$0xff]   ;;  %v787_v28 = vld [vmem:[#allocation2 + $0x78] sm:$0xff]  }
  0x1b   :  { %689 = vmatprep.subr.bf16.mxu1 %v768_v9  ;;  %v784_v25 = vld [vmem:[#allocation2 + $0xf0] sm:$0xff]   ;;  %v788_v29 = vld [vmem:[#allocation2 + $0xf8] ss:$0 sps:$4 sm:$0x33]   ;;  %v42_v32 = vld [vmem:[%s973_s0 + $0x8] sm:$0xff] }
  0x1c   :  { %v785_v26 = vld [vmem:[#allocation2 + $0x30] sm:$0xff]   ;;  %v789_v30 = vld [vmem:[#allocation2 + $0x38] sm:$0xff]   ;;  %v46_v33 = vld [vmem:[%s973_s0 + $0x28] sm:$0xff] }
  0x1d   :  { %668 = vmatpush3.bf16.msra.mxu0 %v769_v10  ;;  %v786_v27 = vld [vmem:[#allocation2 + $0xb0] sm:$0xff]   ;;  %v790_v31 = vld [vmem:[#allocation2 + $0xb8] sm:$0xff]   ;;  %v50_v36 = vpack.c.bf16 %v46_v33, %v42_v32  ;;  %v41_v38 = vld [vmem:[%s973_s0] sm:$0xff] }
  0x1e   :  { %690 = vmatpush3.bf16.msra.mxu1 %v770_v11  ;;  %669 = vmatprep.subr.bf16.mxu0 %v771_v12  ;;  %v44_v34 = vld [vmem:[%s973_s0 + $0x18] sm:$0xff]  ;;  %v45_v39 = vld [vmem:[%s973_s0 + $0x20] sm:$0xff]  ;;  %v43_v40 = vld [vmem:[%s973_s0 + $0x10] sm:$0xff] }
  0x1f   :  { %691 = vmatprep.subr.bf16.mxu1 %v772_v13  ;;  %v48_v35 = vld [vmem:[%s973_s0 + $0x38] sm:$0xff]  ;;  %v49_v42 = vpack.c.bf16 %v45_v39, %v41_v38  ;;  %v47_v43 = vld [vmem:[%s973_s0 + $0x30] sm:$0xff]  ;;  %352 = vmatprep.mubr.bf16.mxu0 %v50_v36  ;;  %v791_v45 = vld [vmem:[%s976_s3] sm:$0xff]  }
  0x20   :  { %v52_v37 = vpack.c.bf16 %v48_v35, %v44_v34  ;;  %v51_v44 = vpack.c.bf16 %v47_v43, %v43_v40  ;;  %v792_v46 = vld [vmem:[%s976_s3 + $0x8] sm:$0xff]   ;;  %v793_v47 = vld [vmem:[%s976_s3 + $0x10] sm:$0xff]   ;;  %v794_v48 = vld [vmem:[%s976_s3 + $0x18] sm:$0xff]  }
  0x21   :  { %670 = vmatpush3.bf16.msra.mxu0 %v773_v14  ;;  %v795_v49 = vld [vmem:[%s976_s3 + $0x20] sm:$0xff]   ;;  %v796_v50 = vld [vmem:[%s976_s3 + $0x28] sm:$0xff]   ;;  %v797_v51 = vld [vmem:[%s976_s3 + $0x30] sm:$0xff]  }
  0x22   :  { %692 = vmatpush3.bf16.msra.mxu1 %v774_v15  ;;  %671 = vmatprep.subr.bf16.mxu0 %v775_v16  ;;  %v798_v52 = vld [vmem:[%s976_s3 + $0x38] sm:$0xff]   ;;  %v799_v53 = vld [vmem:[%s978_s5] sm:$0xff]   ;;  %v800_v54 = vld [vmem:[%s978_s5 + $0x8] sm:$0xff]  }
  0x23   :  { %693 = vmatprep.subr.bf16.mxu1 %v776_v17  ;;  %647 = vmatprep.mubr.msk.bf16.mxu1 %vm312_vm1, %v52_v37  ;;  %v614_v57 = vld [vmem:[%s975_s2] ss:$0 sm:$0xff]  ;;  %v801_v11 = vld [vmem:[%s978_s5 + $0x10] sm:$0xff]   ;;  %v802_v12 = vld [vmem:[%s978_s5 + $0x18] sm:$0xff]  }
  0x24   :  { %v648_v13 = vld [vmem:[%s977_s4] ss:$0 sm:$0xff] }
  0x25   :  { %672 = vmatpush3.bf16.msra.mxu0 %v777_v18 }
  0x26   :  { %694 = vmatpush3.bf16.msra.mxu1 %v778_v19  ;;  %673 = vmatprep.subr.bf16.mxu0 %v779_v20 }
  0x27   :  { %695 = vmatprep.subr.bf16.mxu1 %v780_v21 }
  0x29   :  { %674 = vmatpush3.bf16.msra.mxu0 %v781_v22 }
  0x2a   :  { %696 = vmatpush3.bf16.msra.mxu1 %v782_v23  ;;  %675 = vmatprep.subr.bf16.mxu0 %v783_v24  ;;  %v662_v23 = vld [vmem:[%s979_s6] ss:$0 sm:$0xff] }
  0x2b   :  { %697 = vmatprep.subr.bf16.mxu1 %v784_v25 }
  0x2d   :  { %676 = vmatpush3.bf16.msra.mxu0 %v785_v26 }
  0x2e   :  { %698 = vmatpush3.bf16.msra.mxu1 %v786_v27  ;;  %677 = vmatprep.subr.bf16.mxu0 %v787_v28 }
  0x2f   :  { %753 = vmatprep.subr.msk.bf16.mxu1 %vm316_vm0, %v788_v29 }
  0x31   :  { %678 = vmatpush3.bf16.msra.mxu0 %v789_v30 }
  0x32   :  { %700 = vmatpush3.bf16.msra.mxu1 %v790_v31  ;;  %721 = vmatprep.subr.bf16.mxu0 %v830_v41 }
  0x33   :  { %741 = vmatprep.subr.bf16.mxu1 %v830_v41 }
  0x34   :  { %353 = vmatmul.mubr.bf16.vlgmr.msra.gmra.mrb[0].mxu0 %v49_v42 }
  0x35   :  { %394 = vmatmul.mubr.bf16.vlgmr.msra.gmra.mrb[0].mxu1 %v51_v44  ;;  %722 = vmatpush3.bf16.msra.mxu0 %v791_v45 }
  0x36   :  { %723 = vmatprep.subr.bf16.mxu0 %v830_v41  ;;  %737 = vmatprep.mubr.msk.bf16.mxu0 %vm831_vm2, %v830_v41 }
  0x37   :  { %749 = vmatprep.mubr.msk.bf16.mxu1 %vm831_vm2, %v830_v41  ;;  %742 = vmatpush3.bf16.msra.mxu1 %v799_v53 }
  0x38   :  { %743 = vmatprep.subr.bf16.mxu1 %v830_v41 }
  0x39   :  { %724 = vmatpush3.bf16.msra.mxu0 %v792_v46 }
  0x3a   :  { %725 = vmatprep.subr.bf16.mxu0 %v830_v41 }
  0x3b   :  { %744 = vmatpush3.bf16.msra.mxu1 %v800_v54 }
  0x3c   :  { %745 = vmatprep.subr.bf16.mxu1 %v830_v41 }
  0x3d   :  { %726 = vmatpush3.bf16.msra.mxu0 %v793_v47 }
  0x3e   :  { %727 = vmatprep.subr.bf16.mxu0 %v830_v41 }
  0x3f   :  { %746 = vmatpush3.bf16.msra.mxu1 %v801_v11 }
  0x40   :  { %747 = vmatprep.subr.bf16.mxu1 %v830_v41 }
  0x41   :  { %728 = vmatpush3.bf16.msra.mxu0 %v794_v48 }
  0x42   :  { %729 = vmatprep.subr.bf16.mxu0 %v830_v41 }
  0x43   :  { %748 = vmatpush3.bf16.msra.mxu1 %v802_v12 }
  0x45   :  { %730 = vmatpush3.bf16.msra.mxu0 %v795_v49 }
  0x46   :  { %731 = vmatprep.subr.bf16.mxu0 %v830_v41 }
  0x49   :  { %732 = vmatpush3.bf16.msra.mxu0 %v796_v50 }
  0x4a   :  { %733 = vmatprep.subr.bf16.mxu0 %v830_v41 }
  0x4d   :  { %734 = vmatpush3.bf16.msra.mxu0 %v797_v51 }
  0x4e   :  { %735 = vmatprep.subr.bf16.mxu0 %v830_v41 }
  0x51   :  { %736 = vmatpush3.bf16.msra.mxu0 %v798_v52 }
 0x107   :  { %v679_v55 = vpop.f32.mrb[0].mxu0 }
 0x108   :  { %v701_v56 = vpop.f32.mrb[0].mxu1  ;;  %v680_v58 = vpop.f32.mrb[1].mxu0 }
 0x109   :  { %v681_v59 = vadd.f32 %v680_v58, %v679_v55  ;;  %v702_v60 = vpop.f32.mrb[1].mxu1  ;;  %v682_v61 = vpop.f32.mrb[2].mxu0 }
 0x10a   :  { %v703_v62 = vadd.f32 %v702_v60, %v701_v56  ;;  %v704_v63 = vpop.f32.mrb[2].mxu1  ;;  %v683_v0 = vpop.f32.mrb[3].mxu0 }
 0x10b   :  { %v355_v1 = vadd.f32 %v681_v59, %v614_v57  ;;  %v684_v2 = vadd.f32 %v683_v0, %v682_v61  ;;  %v705_v3 = vpop.f32.mrb[3].mxu1 }
 0x10c   :  { %v706_v4 = vadd.f32 %v705_v3, %v704_v63 }
 0x10d   :  { %v396_v5 = vadd.f32 %v703_v62, %v355_v1  ;;  %v358_v6 = vadd.f32 %v684_v2, %v614_v57 }
 0x10f   :  { %v399_v7 = vadd.f32 %v706_v4, %v358_v6  ;;  %v402_v8 = vmax.f32 %v396_v5, 0.0 }
 0x111   :  { %v403_v9 = vmax.f32 %v399_v7, 0.0 }
 0x113   :  { %v404_v10 = vpack.c.bf16 %v403_v9, %v402_v8 }
 0x115   :  { %738 = vmatmul.mubr.bf16.vlgmr.msra.gmra.mrb[4].mxu0 %v404_v10 }
 0x1e8   :  { %v510_v14 = vpop.f32.mrb[4].mxu0 }
 0x1e9   :  { %v511_v15 = vadd.f32 %v648_v13, %v510_v14  ;;  %v739_v16 = vpop.f32.mrb[5].mxu0 }
 0x1ea   :  { %v513_v17 = vpop.f32.mrb[6].mxu0 }
 0x1eb   :  { %v514_v18 = vadd.f32 %v648_v13, %v513_v17  ;;  %v740_v19 = vpop.f32.mrb[7].mxu0  ;;  %v517_v20 = vmax.f32 %v511_v15, 0.0 }
 0x1ed   :  { %v518_v21 = vmax.f32 %v514_v18, 0.0 }
 0x1ef   :  { %v519_v22 = vpack.c.bf16 %v518_v21, %v517_v20 }
 0x1f1   :  { %750 = vmatmul.mubr.msk.bf16.vlgmr.msra.gmra.mrb[4].mxu1 %vm552_vm3, %v519_v22 }
 0x2c4   :  { %v590_v24 = vpop.f32.mrb[4].mxu1 }
 0x2c5   :  { %v604_v25 = vadd.f32 %v662_v23, %v590_v24  ;;  %v751_v26 = vpop.f32.mrb[5].mxu1 }
 0x2c6   :  { %v593_v27 = vpop.f32.mrb[6].mxu1 }
 0x2c7   :  { %607 = vst.msk [vmem:[%s980_s7] sm:$0xff] %vm606_vm4, %v604_v25  ;;  %v605_v28 = vadd.f32 %v662_v23, %v593_v27  ;;  %v752_v29 = vpop.f32.mrb[7].mxu1 }
 0x2c9   :  { %608 = vst.msk [vmem:[%s980_s7 + $0x8] sm:$0xff] %vm606_vm4, %v605_v28 }
 0x2ca   :  { %613 = vsyncpa [#allocation3], 1 }

</bundles_post_ra>
